<compile_context>
chip_gen: v6e
topology: v6e:2x2x1
jax: 0.10.0
libtpu: 0.0.40
codegen_flags: <defaults>
</compile_context>

<pallas_src>
import functools

import jax
import jax.numpy as jnp
from jax.experimental import pallas as pl
from jax.experimental.pallas import tpu as pltpu

_LANE = 128


def _head_kernel(x_ref, w_ref, b_ref, o_ref, acc_ref, *,
                 total_s, ts, inv_s, lane_acc):
    # x_ref: (TB, C, TS)   w_ref: (C, OUT)   b_ref: (1, OUT)
    # o_ref: (TB, OUT)
    # acc_ref: (TB, C, 128) f32 lane-partial accumulator when lane_acc, else (TB, C) f32.
    k = pl.program_id(1)
    last = pl.num_programs(1) - 1

    @pl.when(k == 0)
    def _init():
        acc_ref[...] = jnp.zeros_like(acc_ref)

    if lane_acc:
        n_chunks = ts // _LANE

        def accumulate(mask_tail):
            # Fold the TS columns into 128 lane-partials: static lane-tile
            # slices + VPU adds only.  The single cross-lane reduce happens
            # once, in the finalize branch below.
            partial = acc_ref[...]
            for j in range(n_chunks):
                slab = x_ref[:, :, j * _LANE:(j + 1) * _LANE]
                if mask_tail:
                    # Ragged last spatial tile: zero out-of-range columns.
                    col = (jax.lax.broadcasted_iota(jnp.int32, slab.shape, 2)
                           + k * ts + j * _LANE)
                    slab = jnp.where(col < total_s, slab, jnp.zeros_like(slab))
                partial = partial + slab.astype(jnp.float32)
            acc_ref[...] = partial

        if total_s % ts != 0:
            # Pay the masking cost only on the final (ragged) spatial step.
            @pl.when(k < last)
            def _plain():
                accumulate(mask_tail=False)

            @pl.when(k == last)
            def _masked():
                accumulate(mask_tail=True)
        else:
            accumulate(mask_tail=False)
    else:
        # Single full-extent spatial block (TS == S, possibly not a multiple
        # of 128): direct lane-axis reduction, runs once.
        acc_ref[...] += jnp.sum(x_ref[...], axis=2, dtype=jnp.float32)

    @pl.when(k == last)
    def _finalize():
        if lane_acc:
            pooled = jnp.sum(acc_ref[...], axis=2)          # (TB, C): one XLU reduce
        else:
            pooled = acc_ref[...]                           # (TB, C)
        # Weight pre-transposed to (C, OUT) in the wrapper; f32 matmul.
        out = jnp.dot(pooled, w_ref[...].astype(jnp.float32),
                      preferred_element_type=jnp.float32)   # (TB, OUT)
        # Fold the 1/S of the mean into the small (TB, OUT) result; bias after.
        out = out * inv_s + b_ref[...].astype(jnp.float32)
        # OUT=20 -> masked narrow store; negligible.  If the head widens,
        # present a lane-dense (multiple-of-128) output slab instead.
        o_ref[...] = out.astype(o_ref.dtype)


def _vmem_capacity_bytes():
    try:
        cap = getattr(pltpu.get_tpu_info(), "vmem_capacity_bytes", None)
        if cap:
            return int(cap)
    except Exception:
        pass
    return 64 << 20  # conservative (v7x-sized) fallback


def _choose_tiles(B, C, S, itemsize):
    """Pick (TB, TS) and return the physical VMEM capacity used for budgeting."""
    vmem_cap = _vmem_capacity_bytes()
    # Budget for the double-buffered x tile pair:
    #   v5e/v6e (128 MiB physical) -> 48 MiB;  v7x (64 MiB) -> 32 MiB.
    x_pair_budget = min(vmem_cap // 2, 48 << 20)

    # Batch tile: multiples of 8 (sublane rule for the (TB, OUT) output block)
    # or the full batch.  For mid-size B keep >= 2 batch tiles so v7x's two
    # TensorCores both get work via the "parallel" batch axis.
    if B <= 8:
        tb = B
    elif B <= 64:
        tb = max(8, (((B + 1) // 2 + 7) // 8) * 8)
    else:
        tb = 64

    def pair_bytes(tb_, ts_):
        return 2 * tb_ * C * ts_ * itemsize

    if pair_bytes(tb, S) <= x_pair_budget or S <= _LANE:
        ts = S  # single full-extent spatial block (also covers S < 128)
    else:
        ts = (x_pair_budget // (2 * tb * C * itemsize)) // _LANE * _LANE
        # Large C: shrink the batch tile (multiples of 8) before blowing budget.
        while ts < _LANE and tb > 8:
            tb = max(8, tb - 8)
            ts = (x_pair_budget // (2 * tb * C * itemsize)) // _LANE * _LANE
        ts = max(_LANE, ts)              # lane-rule floor (last resort, huge C)
        ts = min(ts, (S // _LANE) * _LANE)
    return tb, ts, vmem_cap


def multi_classification_head(x, weight, bias, n_classifications, n_labels,
                              *, tb=None, ts=None, x_buffers=2):
    """x: (B, C, H, W).  weight: (OUT, C) (PyTorch layout).  bias: (OUT,)."""
    B, C = x.shape[0], x.shape[1]
    OUT = weight.shape[0]
    assert weight.shape == (OUT, C)
    assert OUT == n_classifications * n_labels

    S = 1
    for d in x.shape[2:]:
        S *= d
    x_flat = x.reshape(B, C, S)              # (B, C, S)
    w_t = jnp.transpose(weight)              # (C, OUT): one tiny wrapper transpose
    b2 = bias.reshape(1, OUT)                # (1, OUT)

    auto_tb, auto_ts, vmem_cap = _choose_tiles(B, C, S, x.dtype.itemsize)
    tb = auto_tb if tb is None else tb
    ts = auto_ts if ts is None else ts

    lane_acc = (ts % _LANE == 0)
    acc_shape = (tb, C, _LANE) if lane_acc else (tb, C)

    kernel = functools.partial(
        _head_kernel, total_s=S, ts=ts, inv_s=float(1.0 / S), lane_acc=lane_acc)

    grid = (pl.cdiv(B, tb), pl.cdiv(S, ts))

    # Explicit scoped-VMEM limit sized from the chosen tiles (with headroom),
    # capped at physical capacity.  Fixes v5e's 16 MiB default; stays < 64 MiB
    # on v7x because the x-pair budget was derived from vmem_cap.
    itemsize = x.dtype.itemsize
    x_tile_bytes = tb * C * ts * itemsize
    w_bytes = C * OUT * w_t.dtype.itemsize
    b_bytes = OUT * bias.dtype.itemsize
    out_tile_bytes = tb * OUT * itemsize
    acc_bytes = tb * C * (_LANE if lane_acc else 1) * 4
    needed = (x_buffers * x_tile_bytes + 2 * (w_bytes + b_bytes + out_tile_bytes)
              + acc_bytes)
    vmem_limit = int(min(vmem_cap, max(needed + (8 << 20), 32 << 20)))

    cost = pl.CostEstimate(
        flops=int(B * C * S + 2 * B * C * OUT),
        transcendentals=0,
        bytes_accessed=int(B * C * S * itemsize + w_bytes + b_bytes
                           + B * OUT * itemsize))

    x_spec_kwargs = {}
    if x_buffers != 2:
        # Pipeline-depth sweep knob (mainly for v7x's short per-step DMA).
        x_spec_kwargs["pipeline_mode"] = pl.Buffered(x_buffers)

    out = pl.pallas_call(
        kernel,
        out_shape=jax.ShapeDtypeStruct((B, OUT), x.dtype),
        grid=grid,
        in_specs=[
            # x: tiled over batch (parallel) and spatial (reduction, last).
            pl.BlockSpec((tb, C, ts), lambda i, k: (i, 0, k), **x_spec_kwargs),
            # weight / bias: constant block index -> DMA'd once, stay resident.
            pl.BlockSpec((C, OUT), lambda i, k: (0, 0)),
            pl.BlockSpec((1, OUT), lambda i, k: (0, 0)),
        ],
        # Output block is constant across the reduction axis -> written once.
        out_specs=pl.BlockSpec((tb, OUT), lambda i, k: (i, 0)),
        scratch_shapes=[pltpu.VMEM(acc_shape, jnp.float32)],
        compiler_params=pltpu.CompilerParams(
            dimension_semantics=("parallel", "arbitrary"),
            vmem_limit_bytes=vmem_limit),
        cost_estimate=cost,
    )(x_flat, w_t, b2)

    return out.reshape(B, n_classifications, n_labels)


def _init_linear_params(key, in_features, out_features):
    # Deterministic init mimicking nn.Linear default (uniform +/- 1/sqrt(in)).
    kw, kb = jax.random.split(key)
    bound = 1.0 / (in_features ** 0.5)
    weight = jax.random.uniform(kw, (out_features, in_features),
                                minval=-bound, maxval=bound, dtype=jnp.float32)
    bias = jax.random.uniform(kb, (out_features,),
                              minval=-bound, maxval=bound, dtype=jnp.float32)
    return weight, bias


def _reference(x, weight, bias, n_cls, n_lab):
    B, C = x.shape[0], x.shape[1]
    pooled = x.reshape(B, C, -1).mean(axis=2)
    out = pooled @ weight.T + bias
    return out.reshape(B, n_cls, n_lab)


if __name__ == "__main__":
    # Module config (defaults of MultiClassificationHead)
    in_features = 64
    n_classifications = 4
    n_labels = 5

    key = jax.random.PRNGKey(0)
    kx1, kx2, kx3, kp = jax.random.split(key, 4)
    weight, bias = _init_linear_params(kp, in_features,
                                       n_classifications * n_labels)

    # Case 1: small input, auto tile selection (single full-extent spatial
    # block, S = 256 -> lane-partial accumulator path, single grid step).
    x1 = jax.random.normal(kx1, (2, in_features, 16, 16), dtype=jnp.float32)
    out1 = jax.block_until_ready(
        multi_classification_head(x1, weight, bias,
                                  n_classifications, n_labels))
    ref1 = _reference(x1, weight, bias, n_classifications, n_labels)
    assert out1.shape == (2, n_classifications, n_labels)
    assert jnp.allclose(out1, ref1, atol=1e-4, rtol=1e-4)

    # Case 2: exercise the tiled path — 2 batch tiles, spatial-reduction grid,
    # lane-partial accumulation, and a ragged last spatial tile masked only on
    # the final step (S = 15*15 = 225, TS = 128).
    x2 = jax.random.normal(kx2, (16, in_features, 15, 15), dtype=jnp.float32)
    out2 = jax.block_until_ready(
        multi_classification_head(x2, weight, bias,
                                  n_classifications, n_labels, tb=8, ts=128))
    ref2 = _reference(x2, weight, bias, n_classifications, n_labels)
    assert out2.shape == (16, n_classifications, n_labels)
    assert jnp.allclose(out2, ref2, atol=1e-4, rtol=1e-4)

    # Case 3: S < 128 -> full-extent spatial block, direct lane reduction path.
    x3 = jax.random.normal(kx3, (4, in_features, 8, 8), dtype=jnp.float32)
    out3 = jax.block_until_ready(
        multi_classification_head(x3, weight, bias,
                                  n_classifications, n_labels))
    ref3 = _reference(x3, weight, bias, n_classifications, n_labels)
    assert out3.shape == (4, n_classifications, n_labels)
    assert jnp.allclose(out3, ref3, atol=1e-4, rtol=1e-4)

    print("KERNEL_OK")
</pallas_src>

<mosaic_0001>
module attributes {stable_mosaic.version = 11 : i64} {
  func.func @_head_kernel(%arg0: i32, %arg1: i32, %arg2: memref<2x64x256xf32, #tpu.memory_space<vmem>>, %arg3: memref<64x20xf32, #tpu.memory_space<vmem>>, %arg4: memref<1x20xf32, #tpu.memory_space<vmem>>, %arg5: memref<2x20xf32, #tpu.memory_space<vmem>>, %arg6: memref<2x64x128xf32, #tpu.memory_space<vmem>>) attributes {dimension_semantics = [#tpu.dimension_semantics<parallel>, #tpu.dimension_semantics<arbitrary>], iteration_bounds = array<i64: 1, 1>, scalar_prefetch = 0 : i64, scratch_operands = 1 : i64, tpu.core_type = #tpu.core_type<tc>, window_params = [{transform_indices = @transform_0, window_bounds = array<i64: 2, 64, 256>}, {pipeline_mode = #tpu.pipeline_mode<synchronous>, transform_indices = @transform_1, window_bounds = array<i64: 64, 20>}, {pipeline_mode = #tpu.pipeline_mode<synchronous>, transform_indices = @transform_2, window_bounds = array<i64: 1, 20>}, {transform_indices = @transform_3, window_bounds = array<i64: 2, 20>}]} {
    %c0_i32 = arith.constant 0 : i32
    %0 = arith.cmpi eq, %arg1, %c0_i32 : i32
    %1 = arith.extui %0 : i1 to i32
    %c0_i32_0 = arith.constant 0 : i32
    %2 = arith.cmpi ne, %1, %c0_i32_0 : i32
    scf.if %2 {
      %cst = arith.constant 0.000000e+00 : f32
      %12 = vector.broadcast %cst : f32 to vector<2x64x128xf32>
      %c0_13 = arith.constant 0 : index
      %c0_14 = arith.constant 0 : index
      %c0_15 = arith.constant 0 : index
      %13 = vector.load %arg6[%c0_13, %c0_14, %c0_15] : memref<2x64x128xf32, #tpu.memory_space<vmem>>, vector<2x64x128xf32>
      tpu.vector_store %arg6[%c0_13, %c0_14, %c0_15], %12 {strides = array<i32>} : memref<2x64x128xf32, #tpu.memory_space<vmem>>, vector<2x64x128xf32>,
    } else {
    }
    %c0 = arith.constant 0 : index
    %c0_1 = arith.constant 0 : index
    %c0_2 = arith.constant 0 : index
    %3 = vector.load %arg6[%c0, %c0_1, %c0_2] : memref<2x64x128xf32, #tpu.memory_space<vmem>>, vector<2x64x128xf32>
    %c0_3 = arith.constant 0 : index
    %c0_4 = arith.constant 0 : index
    %c0_5 = arith.constant 0 : index
    %4 = vector.load %arg2[%c0_3, %c0_4, %c0_5] : memref<2x64x256xf32, #tpu.memory_space<vmem>>, vector<2x64x128xf32>
    %5 = arith.addf %3, %4 : vector<2x64x128xf32>
    %c0_6 = arith.constant 0 : index
    %c0_7 = arith.constant 0 : index
    %c128 = arith.constant 128 : index
    %6 = vector.load %arg2[%c0_6, %c0_7, %c128] : memref<2x64x256xf32, #tpu.memory_space<vmem>>, vector<2x64x128xf32>
    %7 = arith.addf %5, %6 : vector<2x64x128xf32>
    %c0_8 = arith.constant 0 : index
    %c0_9 = arith.constant 0 : index
    %c0_10 = arith.constant 0 : index
    %8 = vector.load %arg6[%c0_8, %c0_9, %c0_10] : memref<2x64x128xf32, #tpu.memory_space<vmem>>, vector<2x64x128xf32>
    tpu.vector_store %arg6[%c0_8, %c0_9, %c0_10], %7 {strides = array<i32>} : memref<2x64x128xf32, #tpu.memory_space<vmem>>, vector<2x64x128xf32>,
    %c0_i32_11 = arith.constant 0 : i32
    %9 = arith.cmpi eq, %arg1, %c0_i32_11 : i32
    %10 = arith.extui %9 : i1 to i32
    %c0_i32_12 = arith.constant 0 : i32
    %11 = arith.cmpi ne, %10, %c0_i32_12 : i32
    scf.if %11 {
      %c0_13 = arith.constant 0 : index
      %c0_14 = arith.constant 0 : index
      %c0_15 = arith.constant 0 : index
      %12 = vector.load %arg6[%c0_13, %c0_14, %c0_15] : memref<2x64x128xf32, #tpu.memory_space<vmem>>, vector<2x64x128xf32>
      %cst = arith.constant dense<0.000000e+00> : vector<2x64xf32>
      %13 = vector.multi_reduction <add>, %12, %cst [2] : vector<2x64x128xf32> to vector<2x64xf32>
      %c0_16 = arith.constant 0 : index
      %c0_17 = arith.constant 0 : index
      %14 = vector.load %arg3[%c0_16, %c0_17] : memref<64x20xf32, #tpu.memory_space<vmem>>, vector<64x20xf32>
      %cst_18 = arith.constant dense<0.000000e+00> : vector<2x20xf32>
      %15 = tpu.matmul %13, %14, %cst_18 {dimension_numbers = #tpu.dot_dimension_numbers<[1], [0], [0], [1], [0, 0, 1, 1], [], []>} : vector<2x64xf32>, vector<64x20xf32>, vector<2x20xf32> -> vector<2x20xf32>
      %cst_19 = arith.constant 3.906250e-03 : f32
      %16 = vector.broadcast %cst_19 : f32 to vector<2x20xf32>
      %17 = arith.mulf %15, %16 : vector<2x20xf32>
      %c0_20 = arith.constant 0 : index
      %c0_21 = arith.constant 0 : index
      %18 = vector.load %arg4[%c0_20, %c0_21] : memref<1x20xf32, #tpu.memory_space<vmem>>, vector<1x20xf32>
      %19 = vector.broadcast %18 : vector<1x20xf32> to vector<2x20xf32>
      %20 = arith.addf %17, %19 : vector<2x20xf32>
      %c0_22 = arith.constant 0 : index
      %c0_23 = arith.constant 0 : index
      %21 = vector.load %arg5[%c0_22, %c0_23] : memref<2x20xf32, #tpu.memory_space<vmem>>, vector<2x20xf32>
      tpu.vector_store %arg5[%c0_22, %c0_23], %20 {strides = array<i32>} : memref<2x20xf32, #tpu.memory_space<vmem>>, vector<2x20xf32>,
    } else {
    }
    return
  }
  func.func @transform_0(%arg0: i32, %arg1: i32) -> (i32, i32, i32) {
    %c0_i32 = arith.constant 0 : i32
    %c0_i32_0 = arith.constant 0 : i32
    return %arg0, %c0_i32, %arg1 : i32, i32, i32
  }
  func.func @transform_1(%arg0: i32, %arg1: i32) -> (i32, i32) {
    %c0_i32 = arith.constant 0 : i32
    %c0_i32_0 = arith.constant 0 : i32
    %c0_i32_1 = arith.constant 0 : i32
    return %c0_i32, %c0_i32_0 : i32, i32
  }
  func.func @transform_2(%arg0: i32, %arg1: i32) -> (i32, i32) {
    %c0_i32 = arith.constant 0 : i32
    %c0_i32_0 = arith.constant 0 : i32
    %c0_i32_1 = arith.constant 0 : i32
    return %c0_i32, %c0_i32_0 : i32, i32
  }
  func.func @transform_3(%arg0: i32, %arg1: i32) -> (i32, i32) {
    %c0_i32 = arith.constant 0 : i32
    %c0_i32_0 = arith.constant 0 : i32
    return %arg0, %c0_i32 : i32, i32
  }
}

</mosaic_0001>

<bundles_post_ra>
// kernel: tpu_custom_call.1
= control target key start
LH: loop header
LB: loop body
LE: loop exit
PB: predicated region body
PF: predicated region fallthrough
CT: control target
= control target key end

     0   :  { %8 = vsyncpa [#allocation4], 0  ;;  %s564_s0 = inlined_call_operand.hbm [shape: f32[2,64,256], index: 0, kind: input, shape index: {}]   ;;  %s565_s1 = inlined_call_operand.vmem [shape: f32[64,20], index: 1, kind: input, shape index: {}]   ;;  %s566_s2 = inlined_call_operand.vmem [shape: f32[1,20], index: 2, kind: input, shape index: {}]   ;;  %s567_s3 = inlined_call_operand.hbm [shape: f32[2,20], index: 3, kind: output, shape index: {}]  }
   0x1   :  { %9 = vsyncpa [#allocation5], 0  ;;  %s495_s12 = smov [#allocation3]  }
   0x2   :  { %s15_s13 = sshll.u32 %s495_s12, 4  ;;  %s16_s13 = int_to_ptr.vmem [resolvable:$true] %s15_s13 }
   0x3   :  { %s459_s14 = scalar_lea.vmem %s16_s13, 4096  ;;  %p464_p1 = scmp.lt.s32.totalorder %s16_s13, %s16_s13 }
   0x4   :  { %p460_p0 = scmp.ne.s32.totalorder %s16_s13, %s459_s14  ;;  %p465_p2 = scmp.lt.s32.totalorder %s459_s14, %s459_s14 }
   0x6   :  { %p466_p3 = por %p465_p2, %p464_p1 }
   0x8   :  { %p467_p4 = pnand %p466_p3, %p460_p0 }
   0xa   :  { %470 = shalt.err (!%p467_p4)
}
   0xb   :  { %s496_s15 = smov 256   ;;  %s497_s16 = smov 16  }
   0xc   :  { %21 = dma.hbm_to_vmem [thread:$0]  %s564_s0, 4096, %s16_s13, [#allocation4], %s496_s15, %s496_s15, %s497_s16  }
   0xd   :  { %491 = dma.done.wait [#allocation4], 4096  }
   0xe   :  { %492 = vsyncadd [#allocation4], 4294963200  ;;  %v73_v0 = vld [vmem:[#allocation3 + $0x80] sm:$0xff]  ;;  %v105_v1 = vld [vmem:[#allocation3 + $0x88] sm:$0xff]  ;;  %v498_v48 = vmov 0.0   ;;  %vm499_vm0 = vmmov 0   ;;  %v220_v61 = vlaneseq }
   0xf   :  { %v65_v2 = vld [vmem:[#allocation3] sm:$0xff]  ;;  %v121_v3 = vadd.f32 %v105_v1, %v73_v0  ;;  %v97_v4 = vld [vmem:[#allocation3 + $0x8] sm:$0xff]  ;;  %v74_v5 = vld [vmem:[#allocation3 + $0x90] sm:$0xff]  ;;  %426 = vmatprep.subr.mxu0 %v498_v48  ;;  %442 = vmatprep.mubr.msk.f32.mxu0 %vm499_vm0, %v498_v48  ;;  %vm231_vm1 = vcmask 130112   ;;  %vm238_vm2 = vcmask 195712   ;;  %vm245_vm3 = vcmask 261312  }
  0x10   :  { %v106_v6 = vld [vmem:[#allocation3 + $0x98] sm:$0xff]  ;;  %v113_v7 = vadd.f32 %v97_v4, %v65_v2  ;;  %v66_v8 = vld [vmem:[#allocation3 + $0x10] sm:$0xff]  ;;  %v75_v12 = vld [vmem:[#allocation3 + $0xa0] sm:$0xff]  ;;  %v221_v0 = vand.u32 127, %v220_v61  ;;  %vm252_vm4 = vcmask 326912   ;;  %vm259_vm5 = vcmask 392512  }
  0x11   :  { %v98_v9 = vld [vmem:[#allocation3 + $0x18] sm:$0xff]  ;;  %180 = vadd.xlane.f32.xlu1 %v121_v3  ;;  %v122_v10 = vadd.f32 %v106_v6, %v74_v5  ;;  %v107_v13 = vld [vmem:[#allocation3 + $0xa8] sm:$0xff]  ;;  %v67_v14 = vld [vmem:[#allocation3 + $0x20] sm:$0xff]  ;;  %v223_v5 = vshrl.u32 %v220_v61, 7  ;;  %vm266_vm6 = vcmask 458112   ;;  %vm273_vm7 = vcmask 523712  }
  0x12   :  { %164 = vadd.xlane.f32.xlu0 %v113_v7  ;;  %v114_v11 = vadd.f32 %v98_v9, %v66_v8  ;;  %v99_v15 = vld [vmem:[#allocation3 + $0x28] sm:$0xff]  ;;  %v123_v16 = vadd.f32 %v107_v13, %v75_v12  ;;  %v76_v18 = vld [vmem:[#allocation3 + $0xb0] sm:$0xff]  ;;  %v108_v19 = vld [vmem:[#allocation3 + $0xb8] sm:$0xff]  ;;  %v226_v2 = vadd.s32 4294967288, %v221_v0  ;;  %v233_v4 = vadd.s32 4294967280, %v221_v0  ;;  %s500_s8 = smov [#allocation6]  }
  0x13   :  { %v115_v17 = vadd.f32 %v99_v15, %v67_v14  ;;  %v68_v20 = vld [vmem:[#allocation3 + $0x30] sm:$0xff]  ;;  %v100_v21 = vld [vmem:[#allocation3 + $0x38] sm:$0xff]  ;;  %v124_v22 = vadd.f32 %v108_v19, %v76_v18  ;;  %v77_v24 = vld [vmem:[#allocation3 + $0xc0] sm:$0xff]  ;;  %v240_v6 = vadd.s32 4294967272, %v221_v0  ;;  %v247_v7 = vadd.s32 4294967264, %v221_v0  ;;  %s406_s9 = sshll.u32 %s500_s8, 4  ;;  %s407_s9 = int_to_ptr.vmem [resolvable:$true] %s406_s9 }
  0x14   :  { %v116_v23 = vadd.f32 %v100_v21, %v68_v20  ;;  %v109_v25 = vld [vmem:[#allocation3 + $0xc8] sm:$0xff]  ;;  %v69_v26 = vld [vmem:[#allocation3 + $0x40] sm:$0xff]  ;;  %v78_v30 = vld [vmem:[#allocation3 + $0xd0] sm:$0xff]  ;;  %v229_v9 = vsub.s32 %v226_v2, %v223_v5  ;;  %v236_v12 = vsub.s32 %v233_v4, %v223_v5  ;;  %v261_v13 = vadd.s32 4294967248, %v221_v0  ;;  %s471_s10 = scalar_lea.vmem %s407_s9, 32  ;;  %p476_p6 = scmp.lt.s32.totalorder %s407_s9, %s407_s9 }
  0x15   :  { %182 = vadd.xlane.f32.xlu1 %v122_v10  ;;  %v101_v27 = vld [vmem:[#allocation3 + $0x48] sm:$0xff]  ;;  %v125_v28 = vadd.f32 %v109_v25, %v77_v24  ;;  %v110_v31 = vld [vmem:[#allocation3 + $0xd8] sm:$0xff]  ;;  %v70_v32 = vld [vmem:[#allocation3 + $0x50] sm:$0xff]  ;;  %v224_v14 = vsub.s32 %v221_v0, %v223_v5  ;;  %v243_v15 = vsub.s32 %v240_v6, %v223_v5  ;;  %v268_v21 = vadd.s32 4294967240, %v221_v0  ;;  %p472_p5 = scmp.ne.s32.totalorder %s407_s9, %s471_s10  ;;  %p477_p7 = scmp.lt.s32.totalorder %s471_s10, %s471_s10 }
  0x16   :  { %166 = vadd.xlane.f32.xlu0 %v114_v11  ;;  %v117_v29 = vadd.f32 %v101_v27, %v69_v26  ;;  %v102_v33 = vld [vmem:[#allocation3 + $0x58] sm:$0xff]  ;;  %v126_v34 = vadd.f32 %v110_v31, %v78_v30  ;;  %v79_v36 = vld [vmem:[#allocation3 + $0xe0] sm:$0xff]  ;;  %v111_v37 = vld [vmem:[#allocation3 + $0xe8] sm:$0xff]  ;;  %v254_v11 = vadd.s32 4294967256, %v221_v0  ;;  %v264_v24 = vsub.s32 %v261_v13, %v223_v5 }
  0x17   :  { %v118_v35 = vadd.f32 %v102_v33, %v70_v32  ;;  %v71_v38 = vld [vmem:[#allocation3 + $0x60] sm:$0xff]  ;;  %v103_v39 = vld [vmem:[#allocation3 + $0x68] sm:$0xff]  ;;  %v127_v40 = vadd.f32 %v111_v37, %v79_v36  ;;  %v80_v42 = vld [vmem:[#allocation3 + $0xf0] sm:$0xff]  ;;  %v271_v36 = vsub.s32 %v268_v21, %v223_v5  ;;  %vm314_vm8 = vcmask 1041409   ;;  %p478_p8 = por %p477_p7, %p476_p6 }
  0x18   :  { %v119_v41 = vadd.f32 %v103_v39, %v71_v38  ;;  %v112_v43 = vld [vmem:[#allocation3 + $0xf8] sm:$0xff]  ;;  %v72_v44 = vld [vmem:[#allocation3 + $0x70] sm:$0xff]  ;;  %v201_v51 = vld [vmem:[%s565_s1 + $0x28] sm:$0xff]  ;;  %v257_v19 = vsub.s32 %v254_v11, %v223_v5  ;;  %vm316_vm9 = vcmask 523264   ;;  %vm398_vm10 = vcmask 156672  }
  0x19   :  { %184 = vadd.xlane.f32.xlu1 %v123_v16  ;;  %v104_v45 = vld [vmem:[#allocation3 + $0x78] sm:$0xff]  ;;  %v128_v46 = vadd.f32 %v112_v43, %v80_v42  ;;  %v202_v50 = vld [vmem:[%s565_s1 + $0x30] sm:$0xff]  ;;  %v200_v52 = vld [vmem:[%s565_s1 + $0x20] sm:$0xff]  ;;  %v250_v16 = vsub.s32 %v247_v7, %v223_v5  ;;  %p479_p9 = pnand %p478_p8, %p472_p5 }
  0x1a   :  { %168 = vadd.xlane.f32.xlu0 %v115_v17  ;;  %v120_v47 = vadd.f32 %v104_v45, %v72_v44  ;;  %v203_v49 = vld [vmem:[%s565_s1 + $0x38] sm:$0xff]  ;;  %v198_v54 = vld [vmem:[%s565_s1 + $0x10] sm:$0xff]  ;;  %v197_v55 = vld [vmem:[%s565_s1 + $0x8] sm:$0xff] }
  0x1b   :  { %427 = vmatpush3.msra.mxu0 %v203_v49  ;;  %v199_v53 = vld [vmem:[%s565_s1 + $0x18] sm:$0xff]  ;;  %v196_v56 = vld [vmem:[%s565_s1] sm:$0xff] }
  0x1c   :  { %428 = vmatprep.subr.mxu0 %v498_v48 }
  0x1d   :  { %186 = vadd.xlane.f32.xlu1 %v124_v22  ;;  %429 = vmatpush3.msra.mxu0 %v202_v50 }
  0x1e   :  { %170 = vadd.xlane.f32.xlu0 %v116_v23  ;;  %430 = vmatprep.subr.mxu0 %v498_v48 }
  0x1f   :  { %431 = vmatpush3.msra.mxu0 %v201_v51 }
  0x20   :  { %432 = vmatprep.subr.mxu0 %v498_v48 }
  0x21   :  { %188 = vadd.xlane.f32.xlu1 %v125_v28  ;;  %433 = vmatpush3.msra.mxu0 %v200_v52 }
  0x22   :  { %172 = vadd.xlane.f32.xlu0 %v117_v29  ;;  %434 = vmatprep.subr.mxu0 %v498_v48 }
  0x23   :  { %435 = vmatpush3.msra.mxu0 %v199_v53 }
  0x24   :  { %436 = vmatprep.subr.mxu0 %v498_v48 }
  0x25   :  { %190 = vadd.xlane.f32.xlu1 %v126_v34  ;;  %437 = vmatpush3.msra.mxu0 %v198_v54 }
  0x26   :  { %174 = vadd.xlane.f32.xlu0 %v118_v35  ;;  %438 = vmatprep.subr.mxu0 %v498_v48 }
  0x27   :  { %439 = vmatpush3.msra.mxu0 %v197_v55 }
  0x28   :  { %440 = vmatprep.subr.mxu0 %v498_v48 }
  0x29   :  { %192 = vadd.xlane.f32.xlu1 %v127_v40  ;;  %441 = vmatpush3.msra.mxu0 %v196_v56 }
  0x2a   :  { %176 = vadd.xlane.f32.xlu0 %v119_v41 }
  0x2d   :  { %194 = vadd.xlane.f32.xlu1 %v128_v46 }
  0x2e   :  { %178 = vadd.xlane.f32.xlu0 %v120_v47 }
  0x9a   :  { %v181_v57 = vpop.xlane.xlu1 %180 }
  0x9b   :  { %v165_v58 = vpop.xlane.xlu0 %164  ;;  %v278_v25 = vrot.slane %v181_v57, %v224_v14 }
  0x9c   :  { %v225_v28 = vrot.slane %v165_v58, %v224_v14 }
  0x9e   :  { %v183_v59 = vpop.xlane.xlu1 %182 }
  0x9f   :  { %v167_v60 = vpop.xlane.xlu0 %166  ;;  %v282_v18 = vrot.slane %v183_v59, %v229_v9  ;;  %v416_v59 = vld [vmem:[%s566_s2] ss:$0 sm:$0xff] }
  0xa0   :  { %v230_v22 = vrot.slane %v167_v60, %v229_v9 }
  0xa1   :  { %v283_v32 = vsel %vm231_vm1, %v282_v18, %v278_v25 }
  0xa2   :  { %v185_v62 = vpop.xlane.xlu1 %184  ;;  %v232_v37 = vsel %vm231_vm1, %v230_v22, %v225_v28 }
  0xa3   :  { %v169_v63 = vpop.xlane.xlu0 %168  ;;  %v287_v23 = vrot.slane %v185_v62, %v236_v12 }
  0xa4   :  { %v237_v26 = vrot.slane %v169_v63, %v236_v12 }
  0xa5   :  { %v288_v38 = vsel %vm238_vm2, %v287_v23, %v283_v32 }
  0xa6   :  { %v187_v1 = vpop.xlane.xlu1 %186  ;;  %v239_v41 = vsel %vm238_vm2, %v237_v26, %v232_v37 }
  0xa7   :  { %v171_v3 = vpop.xlane.xlu0 %170  ;;  %v292_v27 = vrot.slane %v187_v1, %v243_v15 }
  0xa8   :  { %v244_v29 = vrot.slane %v171_v3, %v243_v15 }
  0xa9   :  { %v293_v42 = vsel %vm245_vm3, %v292_v27, %v288_v38 }
  0xaa   :  { %v189_v8 = vpop.xlane.xlu1 %188  ;;  %v246_v44 = vsel %vm245_vm3, %v244_v29, %v239_v41 }
  0xab   :  { %v173_v10 = vpop.xlane.xlu0 %172  ;;  %v297_v30 = vrot.slane %v189_v8, %v250_v16 }
  0xac   :  { %v251_v33 = vrot.slane %v173_v10, %v250_v16 }
  0xad   :  { %v298_v45 = vsel %vm252_vm4, %v297_v30, %v293_v42 }
  0xae   :  { %v191_v17 = vpop.xlane.xlu1 %190  ;;  %v253_v47 = vsel %vm252_vm4, %v251_v33, %v246_v44 }
  0xaf   :  { %v175_v20 = vpop.xlane.xlu0 %174  ;;  %v302_v34 = vrot.slane %v191_v17, %v257_v19 }
  0xb0   :  { %v258_v39 = vrot.slane %v175_v20, %v257_v19 }
  0xb1   :  { %v303_v48 = vsel %vm259_vm5, %v302_v34, %v298_v45 }
  0xb2   :  { %v193_v31 = vpop.xlane.xlu1 %192  ;;  %v260_v51 = vsel %vm259_vm5, %v258_v39, %v253_v47 }
  0xb3   :  { %v177_v35 = vpop.xlane.xlu0 %176  ;;  %v307_v40 = vrot.slane %v193_v31, %v264_v24 }
  0xb4   :  { %v265_v43 = vrot.slane %v177_v35, %v264_v24 }
  0xb5   :  { %v308_v52 = vsel %vm266_vm6, %v307_v40, %v303_v48 }
  0xb6   :  { %v195_v46 = vpop.xlane.xlu1 %194  ;;  %v267_v54 = vsel %vm266_vm6, %v265_v43, %v260_v51 }
  0xb7   :  { %v312_v49 = vrot.slane %v195_v46, %v271_v36  ;;  %v179_v50 = vpop.xlane.xlu0 %178 }
  0xb8   :  { %v272_v53 = vrot.slane %v179_v50, %v271_v36 }
  0xb9   :  { %v313_v55 = vsel %vm273_vm7, %v312_v49, %v308_v52 }
  0xba   :  { %v274_v56 = vsel %vm273_vm7, %v272_v53, %v267_v54 }
  0xbb   :  { %v315_v57 = vsel %vm314_vm8, %v313_v55, %v274_v56 }
  0xbc   :  { %443 = vmatmul.mubr.msk.f32.vlgmr.msra.gmra.mxu0 %vm316_vm9, %v315_v57 }
 0x17c   :  { %v385_v58 = vpop.f32.mrf.mxu0 }
 0x17d   :  { %v389_v60 = vmul.f32 0.00390625, %v385_v58 }
 0x17e   :  { %v444_v61 = vpop.f32.mrf.mxu0 }
 0x17f   :  { %v397_v62 = vadd.f32 %v416_v59, %v389_v60 }
 0x181   :  { %399 = vst.msk [vmem:[#allocation6] sm:$0x3] %vm398_vm10, %v397_v62 }
 0x182   :  { %482 = shalt.err (!%p479_p9)
}
 0x183   :  { %409 = dma.vmem_to_hbm [thread:$0]  %s407_s9, 32, %s567_s3, [#allocation5]  }
 0x184   :  { %493 = dma.done.wait [#allocation5], 32  }
 0x185   :  { %494 = vsyncadd [#allocation5], 4294967264 }
 0x186   :  { %413 = vsyncpa [#allocation4], 1 }
 0x187   :  { %414 = vsyncpa [#allocation5], 1 }

</bundles_post_ra>
